<compile_context>
chip_gen: v6e
topology: v6e:2x2x1
jax: 0.10.0
libtpu: 0.0.40
codegen_flags: <defaults>
</compile_context>

<pallas_src>
import math

import jax
import jax.numpy as jnp
from jax.experimental import pallas as pl
from jax.experimental.pallas import tpu as pltpu


def _round_up(n, m):
    return ((n + m - 1) // m) * m


def _adapter_injection_kernel(x_ref, w0_ref, b0_ref,
                              wd_ref, bd_ref,
                              wu_ref, bu_ref,
                              o_ref):
    # original_linear: out = x @ W0 + b0   (bf16 operands, f32 MXU accumulation)
    x = x_ref[...]
    out = jnp.dot(x, w0_ref[...], preferred_element_type=jnp.float32) + b0_ref[...]
    # adapter down-projection + ReLU
    h = jnp.dot(out.astype(wd_ref.dtype), wd_ref[...],
                preferred_element_type=jnp.float32) + bd_ref[...]
    h = jnp.maximum(h, 0.0)
    # adapter up-projection; Dropout(p=0) == identity in forward
    adapt = jnp.dot(h.astype(wu_ref.dtype), wu_ref[...],
                    preferred_element_type=jnp.float32) + bu_ref[...]
    # residual add
    o_ref[...] = (out + adapt).astype(o_ref.dtype)


def _choose_tm(M, Fi, Fo, A, max_tm=512, budget_bytes=24 * 1024 * 1024):
    """Largest row tile (multiple of 8, <= max_tm) whose double-buffered
    footprint (x bf16, out f32, resident weights, f32 intermediates) fits the
    VMEM budget on all of v5e/v6e/v7x."""
    weight_bytes = 2 * 2 * (Fi * Fo + Fo * A + A * Fo) + 2 * 4 * (2 * Fo + A)
    tm = min(max_tm, _round_up(M, 8))
    tm = _round_up(tm, 8)
    while tm > 8:
        per_block = (2 * tm * Fi * 2        # x block, bf16, double buffered
                     + 2 * tm * Fo * 4      # out block, f32, double buffered
                     + tm * (2 * Fo + A) * 4)  # f32 out/h/adapt live values
        if weight_bytes + per_block <= budget_bytes:
            break
        tm = max(8, _round_up(tm // 2, 8))
    return max(tm, 8)


def adapter_injection(x, w0, b0, wd, bd, wu, bu, *,
                      max_tm=512, compute_dtype=jnp.bfloat16):
    """AdapterInjection forward.

    x  : [..., in_features]
    w0 : [in_features, out_features]   (PyTorch nn.Linear weight, transposed)
    b0 : [out_features]
    wd : [out_features, adapter_size]; bd : [adapter_size]
    wu : [adapter_size, out_features]; bu : [out_features]
    """
    orig_shape = x.shape
    in_f = x.shape[-1]
    out_f = w0.shape[1]
    adapter = wd.shape[1]
    M = math.prod(orig_shape[:-1])

    # Pad feature dims to multiples of 128 lanes; pad rows to a tile multiple.
    Fi = _round_up(in_f, 128)
    Fo = _round_up(out_f, 128)
    A = _round_up(adapter, 128)
    TM = _choose_tm(M, Fi, Fo, A, max_tm=max_tm)
    Mp = _round_up(M, TM)

    x2d = x.reshape(M, in_f)

    def pad2(a, shape, dtype):
        z = jnp.zeros(shape, dtype)
        return z.at[:a.shape[0], :a.shape[1]].set(a.astype(dtype))

    xp = pad2(x2d, (Mp, Fi), compute_dtype)
    w0p = pad2(w0, (Fi, Fo), compute_dtype)
    wdp = pad2(wd, (Fo, A), compute_dtype)
    wup = pad2(wu, (A, Fo), compute_dtype)
    b0p = pad2(b0.reshape(1, -1), (1, Fo), jnp.float32)
    bdp = pad2(bd.reshape(1, -1), (1, A), jnp.float32)
    bup = pad2(bu.reshape(1, -1), (1, Fo), jnp.float32)

    row_spec = lambda shape: pl.BlockSpec(shape, lambda i: (i, 0))
    resident = lambda shape: pl.BlockSpec(shape, lambda i: (0, 0))

    yp = pl.pallas_call(
        _adapter_injection_kernel,
        out_shape=jax.ShapeDtypeStruct((Mp, Fo), jnp.float32),
        grid=(Mp // TM,),
        in_specs=[
            row_spec((TM, Fi)),
            resident((Fi, Fo)), resident((1, Fo)),
            resident((Fo, A)), resident((1, A)),
            resident((A, Fo)), resident((1, Fo)),
        ],
        out_specs=row_spec((TM, Fo)),
        compiler_params=pltpu.CompilerParams(
            dimension_semantics=("parallel",),
            vmem_limit_bytes=32 * 1024 * 1024,
        ),
    )(xp, w0p, b0p, wdp, bdp, wup, bup)

    return yp[:M, :out_f].reshape(*orig_shape[:-1], out_f)


def reference_f32(x, w0, b0, wd, bd, wu, bu):
    out = x @ w0 + b0
    h = jnp.maximum(out @ wd + bd, 0.0)
    return out + (h @ wu + bu)


if __name__ == "__main__":
    # Small shapes: batch=2, seq=8, in_features=32, out_features=32, adapter_size=16
    batch, seq = 2, 8
    in_features, out_features, adapter_size = 32, 32, 16

    key = jax.random.PRNGKey(0)
    kx, k0w, k0b, kdw, kdb, kuw, kub = jax.random.split(key, 7)

    x = jax.random.normal(kx, (batch, seq, in_features), dtype=jnp.float32)

    # Parameters built directly in the [in, out] layout the kernel consumes
    # (PyTorch nn.Linear stores [out, in]; transpose when porting real weights).
    w0 = jax.random.normal(k0w, (in_features, out_features), jnp.float32) * 0.1
    b0 = jax.random.normal(k0b, (out_features,), jnp.float32) * 0.1
    wd = jax.random.normal(kdw, (out_features, adapter_size), jnp.float32) * 0.1
    bd = jax.random.normal(kdb, (adapter_size,), jnp.float32) * 0.1
    wu = jax.random.normal(kuw, (adapter_size, out_features), jnp.float32) * 0.1
    bu = jax.random.normal(kub, (out_features,), jnp.float32) * 0.1

    run = jax.jit(adapter_injection)
    y = run(x, w0, b0, wd, bd, wu, bu)
    jax.block_until_ready(y)

    # f32 reference; kernel uses bf16 matmul operands so tolerance is loosened.
    y_ref = reference_f32(x, w0, b0, wd, bd, wu, bu)
    assert y.shape == y_ref.shape
    assert jnp.allclose(y, y_ref, atol=3e-2, rtol=3e-2), "mismatch vs reference"

    print("KERNEL_OK")
</pallas_src>

<mosaic_0001>
module attributes {stable_mosaic.version = 11 : i64} {
  func.func @_adapter_injection_kernel(%arg0: i32, %arg1: memref<16x128xbf16, #tpu.memory_space<vmem>>, %arg2: memref<128x128xbf16, #tpu.memory_space<vmem>>, %arg3: memref<1x128xf32, #tpu.memory_space<vmem>>, %arg4: memref<128x128xbf16, #tpu.memory_space<vmem>>, %arg5: memref<1x128xf32, #tpu.memory_space<vmem>>, %arg6: memref<128x128xbf16, #tpu.memory_space<vmem>>, %arg7: memref<1x128xf32, #tpu.memory_space<vmem>>, %arg8: memref<16x128xf32, #tpu.memory_space<vmem>>) attributes {dimension_semantics = [#tpu.dimension_semantics<parallel>], iteration_bounds = array<i64: 1>, scalar_prefetch = 0 : i64, scratch_operands = 0 : i64, tpu.core_type = #tpu.core_type<tc>, window_params = [{transform_indices = @transform_0, window_bounds = array<i64: 16, 128>}, {pipeline_mode = #tpu.pipeline_mode<synchronous>, transform_indices = @transform_1, window_bounds = array<i64: 128, 128>}, {pipeline_mode = #tpu.pipeline_mode<synchronous>, transform_indices = @transform_2, window_bounds = array<i64: 1, 128>}, {pipeline_mode = #tpu.pipeline_mode<synchronous>, transform_indices = @transform_3, window_bounds = array<i64: 128, 128>}, {pipeline_mode = #tpu.pipeline_mode<synchronous>, transform_indices = @transform_4, window_bounds = array<i64: 1, 128>}, {pipeline_mode = #tpu.pipeline_mode<synchronous>, transform_indices = @transform_5, window_bounds = array<i64: 128, 128>}, {pipeline_mode = #tpu.pipeline_mode<synchronous>, transform_indices = @transform_6, window_bounds = array<i64: 1, 128>}, {transform_indices = @transform_7, window_bounds = array<i64: 16, 128>}]} {
    %c0 = arith.constant 0 : index
    %c0_0 = arith.constant 0 : index
    %0 = vector.load %arg1[%c0, %c0_0] : memref<16x128xbf16, #tpu.memory_space<vmem>>, vector<16x128xbf16>
    %c0_1 = arith.constant 0 : index
    %c0_2 = arith.constant 0 : index
    %1 = vector.load %arg2[%c0_1, %c0_2] : memref<128x128xbf16, #tpu.memory_space<vmem>>, vector<128x128xbf16>
    %cst = arith.constant dense<0.000000e+00> : vector<16x128xf32>
    %2 = tpu.matmul %0, %1, %cst {dimension_numbers = #tpu.dot_dimension_numbers<[1], [0], [0], [1], [0, 0, 1, 1], [], []>} : vector<16x128xbf16>, vector<128x128xbf16>, vector<16x128xf32> -> vector<16x128xf32>
    %c0_3 = arith.constant 0 : index
    %c0_4 = arith.constant 0 : index
    %3 = vector.load %arg3[%c0_3, %c0_4] : memref<1x128xf32, #tpu.memory_space<vmem>>, vector<1x128xf32>
    %4 = vector.broadcast %3 : vector<1x128xf32> to vector<16x128xf32>
    %5 = arith.addf %2, %4 : vector<16x128xf32>
    %6 = arith.truncf %5 : vector<16x128xf32> to vector<16x128xbf16>
    %c0_5 = arith.constant 0 : index
    %c0_6 = arith.constant 0 : index
    %7 = vector.load %arg4[%c0_5, %c0_6] : memref<128x128xbf16, #tpu.memory_space<vmem>>, vector<128x128xbf16>
    %cst_7 = arith.constant dense<0.000000e+00> : vector<16x128xf32>
    %8 = tpu.matmul %6, %7, %cst_7 {dimension_numbers = #tpu.dot_dimension_numbers<[1], [0], [0], [1], [0, 0, 1, 1], [], []>} : vector<16x128xbf16>, vector<128x128xbf16>, vector<16x128xf32> -> vector<16x128xf32>
    %c0_8 = arith.constant 0 : index
    %c0_9 = arith.constant 0 : index
    %9 = vector.load %arg5[%c0_8, %c0_9] : memref<1x128xf32, #tpu.memory_space<vmem>>, vector<1x128xf32>
    %10 = vector.broadcast %9 : vector<1x128xf32> to vector<16x128xf32>
    %11 = arith.addf %8, %10 : vector<16x128xf32>
    %cst_10 = arith.constant 0.000000e+00 : f32
    %12 = vector.broadcast %cst_10 : f32 to vector<16x128xf32>
    %13 = arith.maximumf %11, %12 : vector<16x128xf32>
    %14 = arith.truncf %13 : vector<16x128xf32> to vector<16x128xbf16>
    %c0_11 = arith.constant 0 : index
    %c0_12 = arith.constant 0 : index
    %15 = vector.load %arg6[%c0_11, %c0_12] : memref<128x128xbf16, #tpu.memory_space<vmem>>, vector<128x128xbf16>
    %cst_13 = arith.constant dense<0.000000e+00> : vector<16x128xf32>
    %16 = tpu.matmul %14, %15, %cst_13 {dimension_numbers = #tpu.dot_dimension_numbers<[1], [0], [0], [1], [0, 0, 1, 1], [], []>} : vector<16x128xbf16>, vector<128x128xbf16>, vector<16x128xf32> -> vector<16x128xf32>
    %c0_14 = arith.constant 0 : index
    %c0_15 = arith.constant 0 : index
    %17 = vector.load %arg7[%c0_14, %c0_15] : memref<1x128xf32, #tpu.memory_space<vmem>>, vector<1x128xf32>
    %18 = vector.broadcast %17 : vector<1x128xf32> to vector<16x128xf32>
    %19 = arith.addf %16, %18 : vector<16x128xf32>
    %20 = arith.addf %5, %19 : vector<16x128xf32>
    %c0_16 = arith.constant 0 : index
    %c0_17 = arith.constant 0 : index
    %21 = vector.load %arg8[%c0_16, %c0_17] : memref<16x128xf32, #tpu.memory_space<vmem>>, vector<16x128xf32>
    tpu.vector_store %arg8[%c0_16, %c0_17], %20 {strides = array<i32>} : memref<16x128xf32, #tpu.memory_space<vmem>>, vector<16x128xf32>,
    return
  }
  func.func @transform_0(%arg0: i32) -> (i32, i32) {
    %c0_i32 = arith.constant 0 : i32
    %c0_i32_0 = arith.constant 0 : i32
    return %arg0, %c0_i32 : i32, i32
  }
  func.func @transform_1(%arg0: i32) -> (i32, i32) {
    %c0_i32 = arith.constant 0 : i32
    %c0_i32_0 = arith.constant 0 : i32
    %c0_i32_1 = arith.constant 0 : i32
    return %c0_i32, %c0_i32_0 : i32, i32
  }
  func.func @transform_2(%arg0: i32) -> (i32, i32) {
    %c0_i32 = arith.constant 0 : i32
    %c0_i32_0 = arith.constant 0 : i32
    %c0_i32_1 = arith.constant 0 : i32
    return %c0_i32, %c0_i32_0 : i32, i32
  }
  func.func @transform_3(%arg0: i32) -> (i32, i32) {
    %c0_i32 = arith.constant 0 : i32
    %c0_i32_0 = arith.constant 0 : i32
    %c0_i32_1 = arith.constant 0 : i32
    return %c0_i32, %c0_i32_0 : i32, i32
  }
  func.func @transform_4(%arg0: i32) -> (i32, i32) {
    %c0_i32 = arith.constant 0 : i32
    %c0_i32_0 = arith.constant 0 : i32
    %c0_i32_1 = arith.constant 0 : i32
    return %c0_i32, %c0_i32_0 : i32, i32
  }
  func.func @transform_5(%arg0: i32) -> (i32, i32) {
    %c0_i32 = arith.constant 0 : i32
    %c0_i32_0 = arith.constant 0 : i32
    %c0_i32_1 = arith.constant 0 : i32
    return %c0_i32, %c0_i32_0 : i32, i32
  }
  func.func @transform_6(%arg0: i32) -> (i32, i32) {
    %c0_i32 = arith.constant 0 : i32
    %c0_i32_0 = arith.constant 0 : i32
    %c0_i32_1 = arith.constant 0 : i32
    return %c0_i32, %c0_i32_0 : i32, i32
  }
  func.func @transform_7(%arg0: i32) -> (i32, i32) {
    %c0_i32 = arith.constant 0 : i32
    %c0_i32_0 = arith.constant 0 : i32
    return %arg0, %c0_i32 : i32, i32
  }
}

</mosaic_0001>

<bundles_post_ra>
// kernel: adapter_injection.1
= control target key start
LH: loop header
LB: loop body
LE: loop exit
PB: predicated region body
PF: predicated region fallthrough
CT: control target
= control target key end

     0   :  { %v525_v0 = vmov 0.0   ;;  %vm526_vm0 = vmmov 0   ;;  %s687_s1 = inlined_call_operand.vmem [shape: bf16[128,128], index: 1, kind: input, shape index: {}]   ;;  %s688_s3 = inlined_call_operand.vmem [shape: bf16[128,128], index: 3, kind: input, shape index: {}]   ;;  %s689_s0 = inlined_call_operand.vmem [shape: bf16[16,128], index: 0, kind: input, shape index: {}]   ;;  %s690_s5 = inlined_call_operand.vmem [shape: bf16[128,128], index: 5, kind: input, shape index: {}]   ;;  %s691_s2 = inlined_call_operand.vmem [shape: f32[1,128], index: 2, kind: input, shape index: {}]   ;;  %s692_s4 = inlined_call_operand.vmem [shape: f32[1,128], index: 4, kind: input, shape index: {}]   ;;  %s693_s6 = inlined_call_operand.vmem [shape: f32[1,128], index: 6, kind: input, shape index: {}]   ;;  %s694_s7 = inlined_call_operand.vmem [shape: f32[16,128], index: 7, kind: output, shape index: {}]  }
   0x1   :  { %438 = vmatprep.subr.bf16.mxu0 %v525_v0  ;;  %v500_v1 = vld [vmem:[%s687_s1 + $0x38] sm:$0xff]   ;;  %454 = vmatprep.mubr.msk.bf16.mxu0 %vm526_vm0, %v525_v0  ;;  %v501_v2 = vld [vmem:[%s687_s1 + $0x30] sm:$0xff]   ;;  %v502_v3 = vld [vmem:[%s687_s1 + $0x28] sm:$0xff]  }
   0x2   :  { %458 = vmatprep.subr.bf16.mxu1 %v525_v0  ;;  %474 = vmatprep.mubr.msk.bf16.mxu1 %vm526_vm0, %v525_v0  ;;  %v509_v4 = vld [vmem:[%s688_s3 + $0x38] sm:$0xff]   ;;  %v503_v5 = vld [vmem:[%s687_s1 + $0x20] sm:$0xff]   ;;  %v510_v6 = vld [vmem:[%s688_s3 + $0x30] sm:$0xff]  }
   0x3   :  { %439 = vmatpush3.bf16.msra.mxu0 %v500_v1  ;;  %459 = vmatpush3.bf16.msra.mxu1 %v509_v4  ;;  %v504_v7 = vld [vmem:[%s687_s1 + $0x18] sm:$0xff]   ;;  %v511_v8 = vld [vmem:[%s688_s3 + $0x28] sm:$0xff]   ;;  %v505_v9 = vld [vmem:[%s687_s1 + $0x10] sm:$0xff]  }
   0x4   :  { %440 = vmatprep.subr.bf16.mxu0 %v525_v0  ;;  %460 = vmatprep.subr.bf16.mxu1 %v525_v0  ;;  %v512_v10 = vld [vmem:[%s688_s3 + $0x20] sm:$0xff]   ;;  %v506_v11 = vld [vmem:[%s687_s1 + $0x8] sm:$0xff]   ;;  %v513_v12 = vld [vmem:[%s688_s3 + $0x18] sm:$0xff]  }
   0x5   :  { %v507_v13 = vld [vmem:[%s687_s1] sm:$0xff]   ;;  %v514_v14 = vld [vmem:[%s688_s3 + $0x10] sm:$0xff]   ;;  %v515_v16 = vld [vmem:[%s688_s3 + $0x8] sm:$0xff]  }
   0x6   :  { %v508_v15 = vld [vmem:[%s689_s0] sm:$0xff]   ;;  %v517_v18 = vld [vmem:[%s690_s5 + $0x38] sm:$0xff]   ;;  %v518_v19 = vld [vmem:[%s690_s5 + $0x30] sm:$0xff]  }
   0x7   :  { %441 = vmatpush3.bf16.msra.mxu0 %v501_v2  ;;  %461 = vmatpush3.bf16.msra.mxu1 %v510_v6  ;;  %v516_v17 = vld [vmem:[%s688_s3] sm:$0xff]   ;;  %v519_v20 = vld [vmem:[%s690_s5 + $0x28] sm:$0xff]   ;;  %v521_v22 = vld [vmem:[%s690_s5 + $0x18] sm:$0xff]  }
   0x8   :  { %442 = vmatprep.subr.bf16.mxu0 %v525_v0  ;;  %462 = vmatprep.subr.bf16.mxu1 %v525_v0  ;;  %v520_v21 = vld [vmem:[%s690_s5 + $0x20] sm:$0xff]   ;;  %v522_v31 = vld [vmem:[%s690_s5 + $0x10] sm:$0xff]   ;;  %v523_v32 = vld [vmem:[%s690_s5 + $0x8] sm:$0xff]  }
   0x9   :  { %v383_v24 = vld [vmem:[%s691_s2] ss:$0 sm:$0xff] }
   0xa   :  { %v524_v33 = vld [vmem:[%s690_s5] sm:$0xff]  }
   0xb   :  { %443 = vmatpush3.bf16.msra.mxu0 %v502_v3  ;;  %463 = vmatpush3.bf16.msra.mxu1 %v511_v8  ;;  %v393_v34 = vld [vmem:[%s692_s4] ss:$0 sm:$0xff] }
   0xc   :  { %444 = vmatprep.subr.bf16.mxu0 %v525_v0  ;;  %464 = vmatprep.subr.bf16.mxu1 %v525_v0  ;;  %v402_v44 = vld [vmem:[%s693_s6] ss:$0 sm:$0xff] }
   0xf   :  { %445 = vmatpush3.bf16.msra.mxu0 %v503_v5  ;;  %465 = vmatpush3.bf16.msra.mxu1 %v512_v10 }
  0x10   :  { %446 = vmatprep.subr.bf16.mxu0 %v525_v0  ;;  %466 = vmatprep.subr.bf16.mxu1 %v525_v0 }
  0x13   :  { %447 = vmatpush3.bf16.msra.mxu0 %v504_v7  ;;  %467 = vmatpush3.bf16.msra.mxu1 %v513_v12 }
  0x14   :  { %448 = vmatprep.subr.bf16.mxu0 %v525_v0  ;;  %468 = vmatprep.subr.bf16.mxu1 %v525_v0 }
  0x17   :  { %449 = vmatpush3.bf16.msra.mxu0 %v505_v9  ;;  %469 = vmatpush3.bf16.msra.mxu1 %v514_v14 }
  0x18   :  { %450 = vmatprep.subr.bf16.mxu0 %v525_v0  ;;  %470 = vmatprep.subr.bf16.mxu1 %v525_v0 }
  0x1b   :  { %451 = vmatpush3.bf16.msra.mxu0 %v506_v11  ;;  %471 = vmatpush3.bf16.msra.mxu1 %v515_v16 }
  0x1c   :  { %452 = vmatprep.subr.bf16.mxu0 %v525_v0  ;;  %472 = vmatprep.subr.bf16.mxu1 %v525_v0 }
  0x1f   :  { %453 = vmatpush3.bf16.msra.mxu0 %v507_v13  ;;  %473 = vmatpush3.bf16.msra.mxu1 %v516_v17 }
  0x20   :  { %478 = vmatprep.subr.bf16.mxu0 %v525_v0 }
  0x22   :  { %455 = vmatmul.mubr.bf16.vlgmr.msra.gmra.mxu0 %v508_v15 }
  0x23   :  { %494 = vmatprep.mubr.msk.bf16.mxu0 %vm526_vm0, %v525_v0  ;;  %479 = vmatpush3.bf16.msra.mxu0 %v517_v18 }
  0x24   :  { %480 = vmatprep.subr.bf16.mxu0 %v525_v0 }
  0x27   :  { %481 = vmatpush3.bf16.msra.mxu0 %v518_v19 }
  0x28   :  { %482 = vmatprep.subr.bf16.mxu0 %v525_v0 }
  0x2b   :  { %483 = vmatpush3.bf16.msra.mxu0 %v519_v20 }
  0x2c   :  { %484 = vmatprep.subr.bf16.mxu0 %v525_v0 }
  0x2f   :  { %485 = vmatpush3.bf16.msra.mxu0 %v520_v21 }
  0x30   :  { %486 = vmatprep.subr.bf16.mxu0 %v525_v0 }
  0x33   :  { %487 = vmatpush3.bf16.msra.mxu0 %v521_v22 }
  0x34   :  { %488 = vmatprep.subr.bf16.mxu0 %v525_v0 }
  0x37   :  { %489 = vmatpush3.bf16.msra.mxu0 %v522_v31 }
  0x38   :  { %490 = vmatprep.subr.bf16.mxu0 %v525_v0 }
  0x3b   :  { %491 = vmatpush3.bf16.msra.mxu0 %v523_v32 }
  0x3c   :  { %492 = vmatprep.subr.bf16.mxu0 %v525_v0 }
  0x3f   :  { %493 = vmatpush3.bf16.msra.mxu0 %v524_v33 }
  0xe2   :  { %v140_v23 = vpop.f32.mrf.mxu0 }
  0xe3   :  { %v141_v27 = vadd.f32 %v383_v24, %v140_v23 }
  0xe4   :  { %v456_v25 = vpop.f32.mrf.mxu0 }
  0xe6   :  { %v143_v26 = vpop.f32.mrf.mxu0 }
  0xe7   :  { %v144_v28 = vadd.f32 %v383_v24, %v143_v26 }
  0xe8   :  { %v457_v29 = vpop.f32.mrf.mxu0 }
  0xe9   :  { %v147_v30 = vpack.c.bf16 %v144_v28, %v141_v27 }
  0xeb   :  { %475 = vmatmul.mubr.bf16.vlgmr.msra.gmra.mxu1 %v147_v30 }
 0x1ab   :  { %v253_v35 = vpop.f32.mrf.mxu1 }
 0x1ac   :  { %v254_v37 = vadd.f32 %v393_v34, %v253_v35 }
 0x1ad   :  { %v476_v36 = vpop.f32.mrf.mxu1 }
 0x1ae   :  { %v260_v41 = vmax.f32 %v254_v37, 0.0 }
 0x1af   :  { %v256_v38 = vpop.f32.mrf.mxu1 }
 0x1b0   :  { %v257_v39 = vadd.f32 %v393_v34, %v256_v38 }
 0x1b1   :  { %v477_v40 = vpop.f32.mrf.mxu1 }
 0x1b2   :  { %v261_v42 = vmax.f32 %v257_v39, 0.0 }
 0x1b4   :  { %v262_v43 = vpack.c.bf16 %v261_v42, %v260_v41 }
 0x1b6   :  { %495 = vmatmul.mubr.bf16.vlgmr.msra.gmra.mxu0 %v262_v43 }
 0x276   :  { %v368_v45 = vpop.f32.mrf.mxu0 }
 0x277   :  { %v369_v46 = vadd.f32 %v402_v44, %v368_v45 }
 0x278   :  { %v496_v47 = vpop.f32.mrf.mxu0 }
 0x279   :  { %v375_v48 = vadd.f32 %v369_v46, %v141_v27 }
 0x27a   :  { %v371_v49 = vpop.f32.mrf.mxu0 }
 0x27b   :  { %377 = vst [vmem:[%s694_s7] sm:$0xff] %v375_v48  ;;  %v372_v50 = vadd.f32 %v402_v44, %v371_v49 }
 0x27c   :  { %v497_v51 = vpop.f32.mrf.mxu0 }
 0x27d   :  { %v376_v52 = vadd.f32 %v372_v50, %v144_v28 }
 0x27f   :  { %378 = vst [vmem:[%s694_s7 + $0x8] sm:$0xff] %v376_v52 }

</bundles_post_ra>
